<compile_context>
chip_gen: v5e
topology: v5e:2x2
jax: 0.10.0
libtpu: 0.0.40
codegen_flags: <defaults>
</compile_context>

<pallas_src>
import jax
import jax.numpy as jnp
from jax.experimental import pallas as pl
from jax.experimental.pallas import tpu as pltpu


def _round_up(x, m):
    return (x + m - 1) // m * m


def _kernel_vec_fc2(x_ref, w1_ref, b1_ref, w2_ref, b2_ref, o_ref):
    # fc1: (TB, H) @ (H, H//2) + (1, H//2); f32 accumulation regardless of x dtype.
    h = jnp.dot(x_ref[...], w1_ref[...], preferred_element_type=jnp.float32)
    h = h + b1_ref[...]
    # F.leaky_relu default negative_slope = 0.01
    h = jnp.maximum(h, 0.01 * h)
    # fc2 (out_dim == 1): VPU multiply + lane reduction (MXU columns would be 1/256 used).
    r = jnp.sum(h * w2_ref[...], axis=-1, keepdims=True) + b2_ref[...]
    o_ref[...] = r.astype(o_ref.dtype)


def _kernel_mxu_fc2(x_ref, w1_ref, b1_ref, w2_ref, b2_ref, o_ref):
    # General fallback for out_dim > 1.
    h = jnp.dot(x_ref[...], w1_ref[...], preferred_element_type=jnp.float32)
    h = h + b1_ref[...]
    h = jnp.maximum(h, 0.01 * h)
    r = jnp.dot(h, w2_ref[...], preferred_element_type=jnp.float32) + b2_ref[...]
    o_ref[...] = r.astype(o_ref.dtype)


def hidden_to_reward(hidden_state, w1, b1, w2, b2, *, block_b=8192, x_buffers=2):
    """hidden_state: (B, H) float32 or bfloat16. w1:(H,H//2) b1:(H//2,) w2:(H//2,out) b2:(out,).

    Returns (B, out_dim) float32.

    If hidden_state is already bfloat16 (produced upstream in bf16) the fc1
    matmul runs in bf16 with f32 accumulation — halves HBM traffic on the
    dominant x read. No cast of x is performed in this wrapper.
    """
    B, H = hidden_state.shape
    Hh = w1.shape[1]          # H // 2
    out_dim = w2.shape[1]     # 1 by default

    x = hidden_state
    is_bf16 = x.dtype == jnp.bfloat16
    # bf16 min tile is (16, 128); f32 is (8, 128).
    mult = 16 if is_bf16 else 8

    # Batch tile: big enough to amortize per-step overhead (HBM-bound kernel),
    # but capped so there are >= 2 grid steps when possible (both v7x TCs busy),
    # and well inside 32 MiB scoped VMEM when double/triple buffered.
    TB = min(block_b, _round_up(max(pl.cdiv(B, 2), 1), mult))
    TB = max(TB, mult)

    # No wrapper-side pad in the general case: Pallas masks the ragged last
    # block's output writeback (rows are independent). Only the tiny-batch
    # corner case TB > B pads, and that cost is negligible.
    B_out = B
    if TB > B:
        x = jnp.pad(x, ((0, TB - B), (0, 0)))
        B_out = TB
    num_tiles = pl.cdiv(B_out, TB)

    # Only the (tiny) w1 follows the x compute dtype; biases/w2 stay f32.
    w1c = w1.astype(x.dtype)
    b1_2d = b1.reshape(1, Hh).astype(jnp.float32)
    b2_2d = b2.reshape(1, out_dim).astype(jnp.float32)

    if out_dim == 1:
        kernel = _kernel_vec_fc2
        w2_arg = w2.reshape(1, Hh).astype(jnp.float32)     # row, broadcast over sublanes
        w2_spec = pl.BlockSpec((1, Hh), lambda i: (0, 0))
    else:
        kernel = _kernel_mxu_fc2
        w2_arg = w2.astype(jnp.float32)
        w2_spec = pl.BlockSpec((Hh, out_dim), lambda i: (0, 0))

    # x is the only large operand: tiled over batch, double-buffered by default;
    # deeper buffering is available if profiling shows exposed DMA.
    if x_buffers == 2:
        x_spec = pl.BlockSpec((TB, H), lambda i: (i, 0))
    else:
        x_spec = pl.BlockSpec((TB, H), lambda i: (i, 0),
                              pipeline_mode=pl.Buffered(x_buffers))

    out = pl.pallas_call(
        kernel,
        out_shape=jax.ShapeDtypeStruct((B_out, out_dim), jnp.float32),
        grid_spec=pltpu.PrefetchScalarGridSpec(
            num_scalar_prefetch=0,
            grid=(num_tiles,),
            in_specs=[
                x_spec,                                       # x: tiled over batch
                pl.BlockSpec((H, Hh), lambda i: (0, 0)),      # w1: grid-invariant, stays resident
                pl.BlockSpec((1, Hh), lambda i: (0, 0)),      # b1
                w2_spec,                                      # w2
                pl.BlockSpec((1, out_dim), lambda i: (0, 0))  # b2
            ],
            out_specs=pl.BlockSpec((TB, out_dim), lambda i: (i, 0)),
        ),
        compiler_params=pltpu.CompilerParams(
            # Independent batch tiles -> shard across TensorCores on v7x.
            dimension_semantics=("parallel",),
            # 32 MiB is safe on v5e/v6e/v7x and leaves headroom for 2-3 buffered
            # 4 MiB x tiles + intermediates. Raise toward 64 MiB only on
            # v5e/v6e if TB is pushed >= 16384 f32 rows.
            vmem_limit_bytes=32 * 1024 * 1024,
        ),
    )(x, w1c, b1_2d, w2_arg, b2_2d)

    return out[:B] if B_out != B else out


def _init_params(key, hidden_dim=128, output_dim=1):
    """Deterministic synthetic params matching nn.Linear shapes (stored transposed)."""
    k1, k2, k3, k4 = jax.random.split(key, 4)
    half = hidden_dim // 2
    # PyTorch default init: U(-1/sqrt(fan_in), 1/sqrt(fan_in))
    lim1 = 1.0 / jnp.sqrt(hidden_dim)
    lim2 = 1.0 / jnp.sqrt(half)
    w1 = jax.random.uniform(k1, (hidden_dim, half), jnp.float32, -lim1, lim1)
    b1 = jax.random.uniform(k2, (half,), jnp.float32, -lim1, lim1)
    w2 = jax.random.uniform(k3, (half, output_dim), jnp.float32, -lim2, lim2)
    b2 = jax.random.uniform(k4, (output_dim,), jnp.float32, -lim2, lim2)
    return w1, b1, w2, b2


def _reference(x, w1, b1, w2, b2):
    h = x.astype(jnp.float32) @ w1 + b1
    h = jnp.maximum(h, 0.01 * h)
    return h @ w2 + b2


if __name__ == "__main__":
    key = jax.random.PRNGKey(0)
    k_x, k_p, k_x2 = jax.random.split(key, 3)

    hidden_dim = 128
    output_dim = 1
    batch = 8

    hidden_state = jax.random.normal(k_x, (batch, hidden_dim), jnp.float32)
    w1, b1, w2, b2 = _init_params(k_p, hidden_dim, output_dim)

    # 1) f32 path, single tile (exact match to the PyTorch forward).
    r = hidden_to_reward(hidden_state, w1, b1, w2, b2)
    r = jax.block_until_ready(r)
    r_ref = _reference(hidden_state, w1, b1, w2, b2)
    assert r.shape == (batch, output_dim)
    assert jnp.allclose(r, r_ref, atol=1e-5, rtol=1e-5)

    # 2) f32 path, multi-tile ragged grid (no wrapper pad): 4 tiles of 64 rows,
    #    last tile only 8 valid rows -> exercises masked output writeback.
    batch2 = 200
    x2 = jax.random.normal(k_x2, (batch2, hidden_dim), jnp.float32)
    r2 = hidden_to_reward(x2, w1, b1, w2, b2, block_b=64)
    r2 = jax.block_until_ready(r2)
    r2_ref = _reference(x2, w1, b1, w2, b2)
    assert r2.shape == (batch2, output_dim)
    assert jnp.allclose(r2, r2_ref, atol=1e-5, rtol=1e-5)

    # 3) f32 path, default block_b -> TB capped to cdiv(B,2) so 2 tiles
    #    (both v7x TensorCores get work).
    r3 = hidden_to_reward(x2, w1, b1, w2, b2)
    r3 = jax.block_until_ready(r3)
    assert jnp.allclose(r3, r2_ref, atol=1e-5, rtol=1e-5)

    # 4) bf16 producer path: x already bf16 in HBM (no wrapper cast); TB rounded
    #    to a multiple of 16. Looser tolerance (bf16 inputs/weights).
    batch3 = 32
    x3_f32 = jax.random.normal(jax.random.PRNGKey(7), (batch3, hidden_dim), jnp.float32)
    x3_bf16 = x3_f32.astype(jnp.bfloat16)   # stands in for an upstream bf16 producer
    r_bf16 = hidden_to_reward(x3_bf16, w1, b1, w2, b2)
    r_bf16 = jax.block_until_ready(r_bf16)
    r_bf16_ref = _reference(x3_bf16.astype(jnp.float32),
                            w1.astype(jnp.bfloat16).astype(jnp.float32), b1, w2, b2)
    assert r_bf16.shape == (batch3, output_dim)
    assert jnp.allclose(r_bf16, r_bf16_ref, atol=5e-2, rtol=5e-2)

    print("KERNEL_OK")
</pallas_src>

<mosaic_0001>
module attributes {stable_mosaic.version = 11 : i64} {
  func.func @_kernel_vec_fc2(%arg0: i32, %arg1: memref<8x128xf32, #tpu.memory_space<vmem>>, %arg2: memref<128x64xf32, #tpu.memory_space<vmem>>, %arg3: memref<1x64xf32, #tpu.memory_space<vmem>>, %arg4: memref<1x64xf32, #tpu.memory_space<vmem>>, %arg5: memref<1x1xf32, #tpu.memory_space<vmem>>, %arg6: memref<8x1xf32, #tpu.memory_space<vmem>>) attributes {dimension_semantics = [#tpu.dimension_semantics<parallel>], iteration_bounds = array<i64: 1>, scalar_prefetch = 0 : i64, scratch_operands = 0 : i64, tpu.core_type = #tpu.core_type<tc>, window_params = [{transform_indices = @transform_0, window_bounds = array<i64: 8, 128>}, {pipeline_mode = #tpu.pipeline_mode<synchronous>, transform_indices = @transform_1, window_bounds = array<i64: 128, 64>}, {pipeline_mode = #tpu.pipeline_mode<synchronous>, transform_indices = @transform_2, window_bounds = array<i64: 1, 64>}, {pipeline_mode = #tpu.pipeline_mode<synchronous>, transform_indices = @transform_3, window_bounds = array<i64: 1, 64>}, {pipeline_mode = #tpu.pipeline_mode<synchronous>, transform_indices = @transform_4, window_bounds = array<i64: 1, 1>}, {transform_indices = @transform_5, window_bounds = array<i64: 8, 1>}]} {
    %c0 = arith.constant 0 : index
    %c0_0 = arith.constant 0 : index
    %0 = vector.load %arg1[%c0, %c0_0] : memref<8x128xf32, #tpu.memory_space<vmem>>, vector<8x128xf32>
    %c0_1 = arith.constant 0 : index
    %c0_2 = arith.constant 0 : index
    %1 = vector.load %arg2[%c0_1, %c0_2] : memref<128x64xf32, #tpu.memory_space<vmem>>, vector<128x64xf32>
    %cst = arith.constant dense<0.000000e+00> : vector<8x64xf32>
    %2 = tpu.matmul %0, %1, %cst {dimension_numbers = #tpu.dot_dimension_numbers<[1], [0], [0], [1], [0, 0, 1, 1], [], []>} : vector<8x128xf32>, vector<128x64xf32>, vector<8x64xf32> -> vector<8x64xf32>
    %c0_3 = arith.constant 0 : index
    %c0_4 = arith.constant 0 : index
    %3 = vector.load %arg3[%c0_3, %c0_4] : memref<1x64xf32, #tpu.memory_space<vmem>>, vector<1x64xf32>
    %4 = vector.broadcast %3 : vector<1x64xf32> to vector<8x64xf32>
    %5 = arith.addf %2, %4 : vector<8x64xf32>
    %cst_5 = arith.constant 0.00999999977 : f32
    %6 = vector.broadcast %cst_5 : f32 to vector<8x64xf32>
    %7 = arith.mulf %6, %5 : vector<8x64xf32>
    %8 = arith.maximumf %5, %7 : vector<8x64xf32>
    %c0_6 = arith.constant 0 : index
    %c0_7 = arith.constant 0 : index
    %9 = vector.load %arg4[%c0_6, %c0_7] : memref<1x64xf32, #tpu.memory_space<vmem>>, vector<1x64xf32>
    %10 = vector.broadcast %9 : vector<1x64xf32> to vector<8x64xf32>
    %11 = arith.mulf %8, %10 : vector<8x64xf32>
    %cst_8 = arith.constant dense<0.000000e+00> : vector<8xf32>
    %12 = vector.multi_reduction <add>, %11, %cst_8 [1] : vector<8x64xf32> to vector<8xf32>
    %13 = vector.shape_cast %12 : vector<8xf32> to vector<8x1xf32>
    %c0_9 = arith.constant 0 : index
    %c0_10 = arith.constant 0 : index
    %14 = vector.load %arg5[%c0_9, %c0_10] : memref<1x1xf32, #tpu.memory_space<vmem>>, vector<1x1xf32>
    %15 = vector.broadcast %14 : vector<1x1xf32> to vector<8x1xf32>
    %16 = arith.addf %13, %15 : vector<8x1xf32>
    %c0_11 = arith.constant 0 : index
    %c0_12 = arith.constant 0 : index
    %17 = vector.load %arg6[%c0_11, %c0_12] : memref<8x1xf32, #tpu.memory_space<vmem>>, vector<8x1xf32>
    tpu.vector_store %arg6[%c0_11, %c0_12], %16 {strides = array<i32>} : memref<8x1xf32, #tpu.memory_space<vmem>>, vector<8x1xf32>,
    return
  }
  func.func @transform_0(%arg0: i32) -> (i32, i32) {
    %c0_i32 = arith.constant 0 : i32
    %c0_i32_0 = arith.constant 0 : i32
    return %arg0, %c0_i32 : i32, i32
  }
  func.func @transform_1(%arg0: i32) -> (i32, i32) {
    %c0_i32 = arith.constant 0 : i32
    %c0_i32_0 = arith.constant 0 : i32
    %c0_i32_1 = arith.constant 0 : i32
    return %c0_i32, %c0_i32_0 : i32, i32
  }
  func.func @transform_2(%arg0: i32) -> (i32, i32) {
    %c0_i32 = arith.constant 0 : i32
    %c0_i32_0 = arith.constant 0 : i32
    %c0_i32_1 = arith.constant 0 : i32
    return %c0_i32, %c0_i32_0 : i32, i32
  }
  func.func @transform_3(%arg0: i32) -> (i32, i32) {
    %c0_i32 = arith.constant 0 : i32
    %c0_i32_0 = arith.constant 0 : i32
    %c0_i32_1 = arith.constant 0 : i32
    return %c0_i32, %c0_i32_0 : i32, i32
  }
  func.func @transform_4(%arg0: i32) -> (i32, i32) {
    %c0_i32 = arith.constant 0 : i32
    %c0_i32_0 = arith.constant 0 : i32
    %c0_i32_1 = arith.constant 0 : i32
    return %c0_i32, %c0_i32_0 : i32, i32
  }
  func.func @transform_5(%arg0: i32) -> (i32, i32) {
    %c0_i32 = arith.constant 0 : i32
    %c0_i32_0 = arith.constant 0 : i32
    return %arg0, %c0_i32 : i32, i32
  }
}

</mosaic_0001>

<bundles_post_ra>
// kernel: tpu_custom_call.1
= control target key start
LH: loop header
LB: loop body
LE: loop exit
PB: predicated region body
PF: predicated region fallthrough
CT: control target
= control target key end

     0   :  { %vm70_vm0 = vcmask 523264   ;;  %vm79_vm1 = vcmask 7168   ;;  %s181_s1 = inlined_call_operand.vmem [shape: f32[128,64], index: 1, kind: input, shape index: {}]   ;;  %s182_s2 = inlined_call_operand.vmem [shape: f32[1,64], index: 2, kind: input, shape index: {}]   ;;  %s183_s0 = inlined_call_operand.vmem [shape: f32[8,128], index: 0, kind: input, shape index: {}]   ;;  %s184_s3 = inlined_call_operand.vmem [shape: f32[1,64], index: 3, kind: input, shape index: {}]   ;;  %s185_s4 = inlined_call_operand.<no memory space> [shape: f32[1,1], index: 4, kind: input, shape index: {}]   ;;  %s186_s5 = inlined_call_operand.vmem [shape: f32[8,1], index: 5, kind: output, shape index: {}]  }
   0x1   :  { %v38_v0 = vld [vmem:[%s181_s1 + $0x78] sm:$0xff]  ;;  %v37_v1 = vld [vmem:[%s181_s1 + $0x70] sm:$0xff]  ;;  %v36_v2 = vld [vmem:[%s181_s1 + $0x68] sm:$0xff]  ;;  %v10_v17 = vstv %s185_s4 }
   0x2   :  { %43 = vmatpush.msra.mxu0 %v38_v0  ;;  %v35_v3 = vld [vmem:[%s181_s1 + $0x60] sm:$0xff]  ;;  %v34_v4 = vld [vmem:[%s181_s1 + $0x58] sm:$0xff]  ;;  %v33_v5 = vld [vmem:[%s181_s1 + $0x50] sm:$0xff]  ;;  %11 = vst [vmem:[#allocation2] sm:$0x1] %v10_v17 }
   0x3   :  { %v32_v6 = vld [vmem:[%s181_s1 + $0x48] sm:$0xff]  ;;  %v31_v7 = vld [vmem:[%s181_s1 + $0x40] sm:$0xff]  ;;  %v30_v8 = vld [vmem:[%s181_s1 + $0x38] sm:$0xff] }
   0x4   :  { %44 = vmatpush.msra.mxu0 %v37_v1  ;;  %v29_v9 = vld [vmem:[%s181_s1 + $0x30] sm:$0xff]  ;;  %v28_v10 = vld [vmem:[%s181_s1 + $0x28] sm:$0xff]  ;;  %v27_v11 = vld [vmem:[%s181_s1 + $0x20] sm:$0xff] }
   0x5   :  { %v26_v12 = vld [vmem:[%s181_s1 + $0x18] sm:$0xff]  ;;  %v25_v13 = vld [vmem:[%s181_s1 + $0x10] sm:$0xff]  ;;  %v24_v14 = vld [vmem:[%s181_s1 + $0x8] sm:$0xff] }
   0x6   :  { %45 = vmatpush.msra.mxu0 %v36_v2  ;;  %v23_v15 = vld [vmem:[%s181_s1] sm:$0xff] }
   0x7   :  { %v22_v16 = vld [vmem:[%s183_s0] sm:$0xff] }
   0x8   :  { %46 = vmatpush.msra.mxu0 %v35_v3  ;;  %v85_v18 = vld [vmem:[%s182_s2] ss:$0 sm:$0xff] }
   0x9   :  { %v86_v22 = vld [vmem:[%s184_s3] ss:$0 sm:$0xff] }
   0xa   :  { %47 = vmatpush.msra.mxu0 %v34_v4  ;;  %v87_v26 = vld [vmem:[#allocation2] ss:$0 sm:$0xff] }
   0xc   :  { %48 = vmatpush.msra.mxu0 %v33_v5 }
   0xe   :  { %49 = vmatpush.msra.mxu0 %v32_v6 }
  0x10   :  { %50 = vmatpush.msra.mxu0 %v31_v7 }
  0x12   :  { %51 = vmatpush.msra.mxu0 %v30_v8 }
  0x14   :  { %52 = vmatpush.msra.mxu0 %v29_v9 }
  0x16   :  { %53 = vmatpush.msra.mxu0 %v28_v10 }
  0x18   :  { %54 = vmatpush.msra.mxu0 %v27_v11 }
  0x1a   :  { %55 = vmatpush.msra.mxu0 %v26_v12 }
  0x1c   :  { %56 = vmatpush.msra.mxu0 %v25_v13 }
  0x1e   :  { %57 = vmatpush.msra.mxu0 %v24_v14 }
  0x20   :  { %58 = vmatpush.msra.mxu0 %v23_v15 }
  0x21   :  { %59 = vmatmul.f32.vlgmr.msra.gmra.mxu0 %v22_v16 }
  0x9e   :  { %v60_v19 = vpop.f32.mrf.mxu0 }
  0x9f   :  { %v61_v20 = vadd.f32 %v85_v18, %v60_v19 }
  0xa1   :  { %v63_v21 = vmul.f32 0.01, %v61_v20 }
  0xa3   :  { %v64_v23 = vmax.f32 %v61_v20, %v63_v21 }
  0xa5   :  { %v69_v24 = vmul.f32 %v86_v22, %v64_v23 }
  0xa7   :  { %v71_v25 = vsel %vm70_vm0, %v69_v24, 0.0 }
  0xa8   :  { %72 = vadd.xlane.f32.xlu0 %v71_v25 }
 0x11b   :  { %v73_v27 = vpop.xlane.xlu0 %72 }
 0x11c   :  { %v78_v28 = vadd.f32 %v87_v26, %v73_v27 }
 0x11e   :  { %80 = vst.msk [vmem:[%s186_s5] sm:$0xff] %vm79_vm1, %v78_v28 }

</bundles_post_ra>
